<compile_context>
chip_gen: v7x
topology: tpu7x:2x2x1
jax: 0.10.0
libtpu: 0.0.40
codegen_flags: <defaults>
</compile_context>

<pallas_src>
import functools
import math

import jax
import jax.numpy as jnp
from jax.experimental import pallas as pl
from jax.experimental.pallas import tpu as pltpu

HIDDEN = 32                    # config['hidden_dims']
PACK = 4                       # tokens packed per 128-lane vreg row
LANES = PACK * HIDDEN          # 128
SQRT2_INV = 1.0 / math.sqrt(2.0)
SQRT_2_OVER_PI = math.sqrt(2.0 / math.pi)


def _gelu(x):
    # exact erf-based GELU (matches the PyTorch reference `gelu`)
    return x * 0.5 * (1.0 + jax.lax.erf(x * SQRT2_INV))


def _gelu_tanh(x):
    # tanh approximation: routes the transcendental to the EUP slot (faster on
    # v6e/v7x), but deviates ~1e-3 from the exact erf reference.
    return 0.5 * x * (1.0 + jnp.tanh(SQRT_2_OVER_PI * (x + 0.044715 * x * x * x)))


def _relu(x):
    return jnp.maximum(x, 0.0)


def _elu(x, alpha=1.0):
    return jnp.where(x > 0, x, alpha * (jnp.exp(x) - 1.0))


_ACTIVATIONS = {"gelu": _gelu, "gelu_tanh": _gelu_tanh, "relu": _relu, "elu": _elu}


# --------------------------------------------------------------------------- #
# Kernel: one (tm, 128) row-tile of packed tokens per grid step.
# --------------------------------------------------------------------------- #
def ffn_kernel(x_ref, w1_ref, b1_ref, w2_ref, b2_ref, out_ref, *, act):
    x = x_ref[...]                                                  # (tm, 128) f32
    # conv1 (1x1) == per-token linear; block-diag weight keeps lanes dense.
    h = jnp.dot(x, w1_ref[...], preferred_element_type=jnp.float32) + b1_ref[...]
    # TODO(synk): dropout1/dropout2 are eval-mode identities (no in-kernel RNG).
    h = act(h)
    # conv2 (1x1)
    y = jnp.dot(h, w2_ref[...], preferred_element_type=jnp.float32) + b2_ref[...]
    # residual
    out_ref[...] = (y + x).astype(out_ref.dtype)


# --------------------------------------------------------------------------- #
# Parameter packing (done once, outside the kernel)
# --------------------------------------------------------------------------- #
def pack_ffn_params(params):
    """Build lane-dense (128-wide) block-diagonal weights / tiled biases."""
    eye = jnp.eye(PACK, dtype=jnp.float32)
    return {
        "w1": jnp.kron(eye, params["w1"]),          # (128, 128) block-diagonal
        "b1": jnp.tile(params["b1"], (1, PACK)),    # (1, 128)
        "w2": jnp.kron(eye, params["w2"]),          # (128, 128) block-diagonal
        "b2": jnp.tile(params["b2"], (1, PACK)),    # (1, 128)
    }


# --------------------------------------------------------------------------- #
# Wrapper
# --------------------------------------------------------------------------- #
def feed_forward_network(x, packed_params, *, activation="gelu", block_rows=1024):
    """x: (B, S, H) f32.  packed_params from pack_ffn_params()."""
    B, S, H = x.shape
    assert H == HIDDEN
    R = B * S

    # ---- pack 4 tokens per 128-lane row (lane-dense layout) ----
    rp = pl.cdiv(R, PACK)                       # packed rows (pre-tile-padding)
    r_pad = rp * PACK
    x2d = x.reshape(R, H)
    if r_pad != R:
        x2d = jnp.pad(x2d, ((0, r_pad - R), (0, 0)))
    xp = x2d.reshape(rp, LANES)

    # ---- choose row tile: single full block when small, else tile + pipeline ----
    if rp <= block_rows:
        tm = rp                                 # full-extent block, grid=(1,)
    else:
        tm = block_rows                         # multiple of 8 -> (8,128)-legal
        rp_tiled = pl.cdiv(rp, tm) * tm
        if rp_tiled != rp:
            xp = jnp.pad(xp, ((0, rp_tiled - rp), (0, 0)))
    rp_total = xp.shape[0]
    grid = (rp_total // tm,)

    rows_spec = pl.BlockSpec((tm, LANES), lambda i: (i, 0))          # streamed
    resident = lambda shape: pl.BlockSpec(shape, lambda i: (0, 0))   # VMEM-resident

    flops = 2 * 2 * rp_total * LANES * LANES                         # two matmuls
    bytes_accessed = 4 * (2 * rp_total * LANES + 2 * LANES * LANES + 2 * LANES)
    transcendentals = rp_total * LANES

    out_packed = pl.pallas_call(
        functools.partial(ffn_kernel, act=_ACTIVATIONS[activation]),
        out_shape=jax.ShapeDtypeStruct((rp_total, LANES), jnp.float32),
        grid=grid,
        in_specs=[
            rows_spec,                             # x (packed rows)
            resident((LANES, LANES)),              # conv1 weight (block-diag)
            resident((1, LANES)),                  # conv1 bias (tiled)
            resident((LANES, LANES)),              # conv2 weight (block-diag)
            resident((1, LANES)),                  # conv2 bias (tiled)
        ],
        out_specs=rows_spec,
        input_output_aliases={0: 0},               # out = x + f(x); donate x buffer
        cost_estimate=pl.CostEstimate(
            flops=flops,
            transcendentals=transcendentals,
            bytes_accessed=bytes_accessed),
        compiler_params=pltpu.CompilerParams(
            dimension_semantics=("parallel",)),    # rows independent; v7x megacore
    )(xp, packed_params["w1"], packed_params["b1"],
      packed_params["w2"], packed_params["b2"])

    # ---- unpack back to (B, S, H) ----
    out2d = out_packed.reshape(rp_total * PACK, H)[:R]
    return out2d.reshape(B, S, H)


# --------------------------------------------------------------------------- #
# Reference / init
# --------------------------------------------------------------------------- #
def _reference(x2d, params, activation="gelu"):
    act = _ACTIVATIONS[activation]
    h = act(x2d @ params["w1"] + params["b1"])
    return x2d + (h @ params["w2"] + params["b2"])


def init_params(key):
    """Deterministic synthetic Conv1d(k=1) params, PyTorch-style uniform init,
    stored pre-transposed to (in, out) so the math is x @ W + b."""
    k1, k2, k3, k4 = jax.random.split(key, 4)
    bound = 1.0 / math.sqrt(HIDDEN)               # fan_in = in_channels * kernel_size
    return {
        "w1": jax.random.uniform(k1, (HIDDEN, HIDDEN), jnp.float32, -bound, bound),
        "b1": jax.random.uniform(k2, (1, HIDDEN), jnp.float32, -bound, bound),
        "w2": jax.random.uniform(k3, (HIDDEN, HIDDEN), jnp.float32, -bound, bound),
        "b2": jax.random.uniform(k4, (1, HIDDEN), jnp.float32, -bound, bound),
    }


if __name__ == "__main__":
    key = jax.random.PRNGKey(0)
    k_x, k_p = jax.random.split(key)

    B, S = 2, 8
    x = jax.random.normal(k_x, (B, S, HIDDEN), jnp.float32)
    params = init_params(k_p)
    packed = pack_ffn_params(params)              # precomputed once, reused per call

    out = feed_forward_network(x, packed, activation="gelu")
    jax.block_until_ready(out)
    assert out.shape == (B, S, HIDDEN)

    ref = _reference(x.reshape(-1, HIDDEN), params).reshape(B, S, HIDDEN)
    assert jnp.allclose(out, ref, rtol=1e-5, atol=1e-5), float(
        jnp.max(jnp.abs(out - ref)))

    print("KERNEL_OK")
</pallas_src>

<mosaic_0001>
module attributes {stable_mosaic.version = 11 : i64} {
  func.func @ffn_kernel(%arg0: i32, %arg1: memref<4x128xf32, #tpu.memory_space<vmem>>, %arg2: memref<128x128xf32, #tpu.memory_space<vmem>>, %arg3: memref<1x128xf32, #tpu.memory_space<vmem>>, %arg4: memref<128x128xf32, #tpu.memory_space<vmem>>, %arg5: memref<1x128xf32, #tpu.memory_space<vmem>>, %arg6: memref<4x128xf32, #tpu.memory_space<vmem>>) attributes {dimension_semantics = [#tpu.dimension_semantics<parallel>], iteration_bounds = array<i64: 1>, scalar_prefetch = 0 : i64, scratch_operands = 0 : i64, tpu.core_type = #tpu.core_type<tc>, window_params = [{transform_indices = @transform_0, window_bounds = array<i64: 4, 128>}, {pipeline_mode = #tpu.pipeline_mode<synchronous>, transform_indices = @transform_1, window_bounds = array<i64: 128, 128>}, {pipeline_mode = #tpu.pipeline_mode<synchronous>, transform_indices = @transform_2, window_bounds = array<i64: 1, 128>}, {pipeline_mode = #tpu.pipeline_mode<synchronous>, transform_indices = @transform_3, window_bounds = array<i64: 128, 128>}, {pipeline_mode = #tpu.pipeline_mode<synchronous>, transform_indices = @transform_4, window_bounds = array<i64: 1, 128>}, {transform_indices = @transform_5, window_bounds = array<i64: 4, 128>}]} {
    %c0 = arith.constant 0 : index
    %c0_0 = arith.constant 0 : index
    %0 = vector.load %arg1[%c0, %c0_0] : memref<4x128xf32, #tpu.memory_space<vmem>>, vector<4x128xf32>
    %c0_1 = arith.constant 0 : index
    %c0_2 = arith.constant 0 : index
    %1 = vector.load %arg2[%c0_1, %c0_2] : memref<128x128xf32, #tpu.memory_space<vmem>>, vector<128x128xf32>
    %cst = arith.constant dense<0.000000e+00> : vector<4x128xf32>
    %2 = tpu.matmul %0, %1, %cst {dimension_numbers = #tpu.dot_dimension_numbers<[1], [0], [0], [1], [0, 0, 1, 1], [], []>} : vector<4x128xf32>, vector<128x128xf32>, vector<4x128xf32> -> vector<4x128xf32>
    %c0_3 = arith.constant 0 : index
    %c0_4 = arith.constant 0 : index
    %3 = vector.load %arg3[%c0_3, %c0_4] : memref<1x128xf32, #tpu.memory_space<vmem>>, vector<1x128xf32>
    %4 = vector.broadcast %3 : vector<1x128xf32> to vector<4x128xf32>
    %5 = arith.addf %2, %4 : vector<4x128xf32>
    %cst_5 = arith.constant 5.000000e-01 : f32
    %6 = vector.broadcast %cst_5 : f32 to vector<4x128xf32>
    %7 = arith.mulf %5, %6 : vector<4x128xf32>
    %cst_6 = arith.constant 0.707106769 : f32
    %8 = vector.broadcast %cst_6 : f32 to vector<4x128xf32>
    %9 = arith.mulf %5, %8 : vector<4x128xf32>
    %10 = math.erf %9 : vector<4x128xf32>
    %cst_7 = arith.constant 1.000000e+00 : f32
    %11 = vector.broadcast %cst_7 : f32 to vector<4x128xf32>
    %12 = arith.addf %11, %10 : vector<4x128xf32>
    %13 = arith.mulf %7, %12 : vector<4x128xf32>
    %c0_8 = arith.constant 0 : index
    %c0_9 = arith.constant 0 : index
    %14 = vector.load %arg4[%c0_8, %c0_9] : memref<128x128xf32, #tpu.memory_space<vmem>>, vector<128x128xf32>
    %cst_10 = arith.constant dense<0.000000e+00> : vector<4x128xf32>
    %15 = tpu.matmul %13, %14, %cst_10 {dimension_numbers = #tpu.dot_dimension_numbers<[1], [0], [0], [1], [0, 0, 1, 1], [], []>} : vector<4x128xf32>, vector<128x128xf32>, vector<4x128xf32> -> vector<4x128xf32>
    %c0_11 = arith.constant 0 : index
    %c0_12 = arith.constant 0 : index
    %16 = vector.load %arg5[%c0_11, %c0_12] : memref<1x128xf32, #tpu.memory_space<vmem>>, vector<1x128xf32>
    %17 = vector.broadcast %16 : vector<1x128xf32> to vector<4x128xf32>
    %18 = arith.addf %15, %17 : vector<4x128xf32>
    %19 = arith.addf %18, %0 : vector<4x128xf32>
    %c0_13 = arith.constant 0 : index
    %c0_14 = arith.constant 0 : index
    %20 = vector.load %arg6[%c0_13, %c0_14] : memref<4x128xf32, #tpu.memory_space<vmem>>, vector<4x128xf32>
    tpu.vector_store %arg6[%c0_13, %c0_14], %19 {strides = array<i32>} : memref<4x128xf32, #tpu.memory_space<vmem>>, vector<4x128xf32>,
    return
  }
  func.func @transform_0(%arg0: i32) -> (i32, i32) {
    %c0_i32 = arith.constant 0 : i32
    %c0_i32_0 = arith.constant 0 : i32
    return %arg0, %c0_i32 : i32, i32
  }
  func.func @transform_1(%arg0: i32) -> (i32, i32) {
    %c0_i32 = arith.constant 0 : i32
    %c0_i32_0 = arith.constant 0 : i32
    %c0_i32_1 = arith.constant 0 : i32
    return %c0_i32, %c0_i32_0 : i32, i32
  }
  func.func @transform_2(%arg0: i32) -> (i32, i32) {
    %c0_i32 = arith.constant 0 : i32
    %c0_i32_0 = arith.constant 0 : i32
    %c0_i32_1 = arith.constant 0 : i32
    return %c0_i32, %c0_i32_0 : i32, i32
  }
  func.func @transform_3(%arg0: i32) -> (i32, i32) {
    %c0_i32 = arith.constant 0 : i32
    %c0_i32_0 = arith.constant 0 : i32
    %c0_i32_1 = arith.constant 0 : i32
    return %c0_i32, %c0_i32_0 : i32, i32
  }
  func.func @transform_4(%arg0: i32) -> (i32, i32) {
    %c0_i32 = arith.constant 0 : i32
    %c0_i32_0 = arith.constant 0 : i32
    %c0_i32_1 = arith.constant 0 : i32
    return %c0_i32, %c0_i32_0 : i32, i32
  }
  func.func @transform_5(%arg0: i32) -> (i32, i32) {
    %c0_i32 = arith.constant 0 : i32
    %c0_i32_0 = arith.constant 0 : i32
    return %arg0, %c0_i32 : i32, i32
  }
}

</mosaic_0001>

<bundles_post_ra>
// kernel: tpu_custom_call.1
= control target key start
LH: loop header
LB: loop body
LE: loop exit
PB: predicated region body
PF: predicated region fallthrough
CT: control target
= control target key end

     0   :  { %10 = vsyncpa [#allocation3], 0  ;;  %s644_s0 = inlined_call_operand.hbm [shape: f32[4,128], index: 0, kind: input, shape index: {}, may-alias: {0,5}]   ;;  %s645_s1 = inlined_call_operand.hbm [shape: f32[128,128], index: 1, kind: input, shape index: {}]   ;;  %s646_s2 = inlined_call_operand.vmem [shape: f32[1,128], index: 2, kind: input, shape index: {}]   ;;  %s647_s3 = inlined_call_operand.hbm [shape: f32[128,128], index: 3, kind: input, shape index: {}]   ;;  %s648_s4 = inlined_call_operand.vmem [shape: f32[1,128], index: 4, kind: input, shape index: {}]   ;;  %s649_s5 = inlined_call_operand.hbm [shape: f32[4,128], index: 5, kind: output, shape index: {}, may-alias: {0,5}]  }
   0x1   :  { %11 = vsyncpa [#allocation6], 0 }
   0x2   :  { %12 = vsyncpa [#allocation4], 0  ;;  %s529_s18 = smov [#allocation5]   ;;  %s435_s22 = scalar_lea.hbm %s645_s1, 2048 }
   0x3   :  { %s28_s19 = sshll.u32 %s529_s18, 4  ;;  %p436_p0 = scmp.ne.s32.totalorder %s645_s1, %s435_s22  ;;  %s29_s19 = int_to_ptr.vmem [resolvable:$true] %s28_s19 }
   0x4   :  { %p439_p1 = scmp.lt.u32.totalorder %s435_s22, %s645_s1 }
   0x6   :  { %p441_p2 = pnand %p439_p1, %p436_p0 }
   0x8   :  { %444 = shalt.err (!%p441_p2)
}
   0x9   :  { %s445_s27 = scalar_lea.vmem %s29_s19, 2048  ;;  %p450_p4 = scmp.lt.s32.totalorder %s29_s19, %s29_s19 }
   0xa   :  { %p446_p3 = scmp.ne.s32.totalorder %s29_s19, %s445_s27  ;;  %p451_p5 = scmp.lt.s32.totalorder %s445_s27, %s445_s27 }
   0xc   :  { %p452_p6 = por %p451_p5, %p450_p4 }
   0xe   :  { %p453_p7 = pnand %p452_p6, %p446_p3 }
  0x10   :  { %456 = shalt.err (!%p453_p7)
}
  0x11   :  { %s530_s28 = smov 128   ;;  %s531_s29 = smov 8  }
  0x12   :  { %34 = dma.hbm_to_vmem [thread:$0]  %s645_s1, 2048, %s29_s19, [#allocation6], %s530_s28, %s530_s28, %s531_s29  }
  0x13   :  { %s532_s7 = smov [#allocation2]   ;;  %s533_s9 = smov [#allocation7]  }
  0x14   :  { %s19_s8 = sshll.u32 %s532_s7, 4  ;;  %s42_s10 = sshll.u32 %s533_s9, 4  ;;  %s20_s8 = int_to_ptr.vmem [resolvable:$true] %s19_s8  ;;  %s43_s10 = int_to_ptr.vmem [resolvable:$true] %s42_s10 }
  0x15   :  { %s457_s13 = scalar_lea.hbm %s644_s0, 64 }
  0x16   :  { %p458_p8 = scmp.ne.s32.totalorder %s644_s0, %s457_s13  ;;  %p461_p9 = scmp.lt.u32.totalorder %s457_s13, %s644_s0 }
  0x18   :  { %p463_p10 = pnand %p461_p9, %p458_p8 }
  0x1a   :  { %466 = shalt.err (!%p463_p10)
}
  0x1b   :  { %s467_s1 = scalar_lea.vmem %s20_s8, 64  ;;  %p472_p12 = scmp.lt.s32.totalorder %s20_s8, %s20_s8 }
  0x1c   :  { %p468_p11 = scmp.ne.s32.totalorder %s20_s8, %s467_s1  ;;  %p473_p13 = scmp.lt.s32.totalorder %s467_s1, %s467_s1 }
  0x1e   :  { %p474_p0 = por %p473_p13, %p472_p12 }
  0x20   :  { %p475_p1 = pnand %p474_p0, %p468_p11 }
  0x22   :  { %478 = shalt.err (!%p475_p1)
}
  0x23   :  { %22 = dma.hbm_to_vmem [thread:$0]  %s644_s0, 64, %s20_s8, [#allocation3]  }
  0x24   :  { %s479_s22 = scalar_lea.hbm %s647_s3, 2048 }
  0x25   :  { %p480_p2 = scmp.ne.s32.totalorder %s647_s3, %s479_s22  ;;  %p483_p3 = scmp.lt.u32.totalorder %s479_s22, %s647_s3 }
  0x27   :  { %p485_p4 = pnand %p483_p3, %p480_p2 }
  0x29   :  { %488 = shalt.err (!%p485_p4)
}
  0x2a   :  { %s489_s27 = scalar_lea.vmem %s43_s10, 2048  ;;  %p494_p6 = scmp.lt.s32.totalorder %s43_s10, %s43_s10 }
  0x2b   :  { %p490_p5 = scmp.ne.s32.totalorder %s43_s10, %s489_s27  ;;  %p495_p7 = scmp.lt.s32.totalorder %s489_s27, %s489_s27 }
  0x2d   :  { %p496_p8 = por %p495_p7, %p494_p6 }
  0x2f   :  { %p497_p9 = pnand %p496_p8, %p490_p5 }
  0x31   :  { %500 = shalt.err (!%p497_p9)
}
  0x32   :  { %48 = dma.hbm_to_vmem [thread:$0]  %s647_s3, 2048, %s43_s10, [#allocation6], %s530_s28, %s530_s28, %s531_s29  }
  0x33   :  { %523 = dma.done.wait [#allocation3], 64  }
  0x34   :  { %524 = vsyncadd [#allocation3], 4294967232 }
  0x35   :  { %525 = dma.done.wait [#allocation6], 4096  }
  0x36   :  { %526 = vsyncadd [#allocation6], 4294963200  ;;  %v534_v0 = vmov 0.0|0.0   ;;  %vm535_vm0 = vmmov 0   ;;  %v536_v1 = vmov 0.0   ;;  %v61_v2 = vld [vmem:[#allocation5] sm:$0xff] }
  0x37   :  { %376 = vmatprep.subr.bf16.mxu0 %v534_v0  ;;  %338 = vmatprep.mubr.msk.f32.mxu0 %vm535_vm0, %v536_v1  ;;  %v62_v3 = vld [vmem:[#allocation5 + $0x8] sm:$0xff]  ;;  %v63_v4 = vld [vmem:[#allocation5 + $0x10] sm:$0xff]  ;;  %v64_v6 = vld [vmem:[#allocation5 + $0x18] sm:$0xff]  ;;  %s537_s7 = smov [#allocation8]  }
  0x38   :  { %400 = vmatprep.subr.bf16.mxu1 %v534_v0  ;;  %373 = vmatprep.mubr.msk.f32.mxu1 %vm535_vm0, %v536_v1  ;;  %v377_v5 = vpack.c.bf16 %v62_v3, %v61_v2  ;;  %v380_v7 = vpack.c.bf16 %v64_v6, %v63_v4  ;;  %v65_v8 = vld [vmem:[#allocation5 + $0x20] sm:$0xff]  ;;  %v66_v9 = vld [vmem:[#allocation5 + $0x28] sm:$0xff]  ;;  %v161_v12 = vld [vmem:[#allocation7 + $0x10] sm:$0xff]  ;;  %s260_s8 = sshll.u32 %s537_s7, 4  ;;  %s261_s8 = int_to_ptr.vmem [resolvable:$true] %s260_s8 }
  0x39   :  { %v159_v10 = vld [vmem:[#allocation7] sm:$0xff]  ;;  %v160_v11 = vld [vmem:[#allocation7 + $0x8] sm:$0xff]  ;;  %v162_v13 = vld [vmem:[#allocation7 + $0x18] sm:$0xff]  ;;  %v383_v14 = vpack.c.bf16 %v66_v9, %v65_v8  ;;  %p506_p11 = scmp.lt.s32.totalorder %s261_s8, %s261_s8 }
  0x3a   :  { %378 = vmatpush3.bf16.msra.mxu0 %v377_v5  ;;  %v401_v15 = vpack.c.bf16 %v160_v11, %v159_v10  ;;  %v67_v16 = vld [vmem:[#allocation5 + $0x30] sm:$0xff]  ;;  %v68_v17 = vld [vmem:[#allocation5 + $0x38] sm:$0xff]  ;;  %v404_v18 = vpack.c.bf16 %v162_v13, %v161_v12  ;;  %v163_v19 = vld [vmem:[#allocation7 + $0x20] sm:$0xff] }
  0x3b   :  { %379 = vmatprep.subr.bf16.mxu0 %v534_v0  ;;  %v164_v20 = vld [vmem:[#allocation7 + $0x28] sm:$0xff]  ;;  %v386_v21 = vpack.c.bf16 %v68_v17, %v67_v16  ;;  %v69_v22 = vld [vmem:[#allocation5 + $0x40] sm:$0xff]  ;;  %v71_v26 = vld [vmem:[#allocation5 + $0x50] sm:$0xff] }
  0x3c   :  { %402 = vmatpush3.bf16.msra.mxu1 %v401_v15  ;;  %v70_v23 = vld [vmem:[#allocation5 + $0x48] sm:$0xff]  ;;  %v407_v24 = vpack.c.bf16 %v164_v20, %v163_v19  ;;  %v72_v27 = vld [vmem:[#allocation5 + $0x58] sm:$0xff]  ;;  %v73_v29 = vld [vmem:[#allocation5 + $0x60] sm:$0xff] }
  0x3d   :  { %403 = vmatprep.subr.bf16.mxu1 %v534_v0  ;;  %v389_v25 = vpack.c.bf16 %v70_v23, %v69_v22  ;;  %v392_v28 = vpack.c.bf16 %v72_v27, %v71_v26  ;;  %v74_v30 = vld [vmem:[#allocation5 + $0x68] sm:$0xff]  ;;  %v75_v32 = vld [vmem:[#allocation5 + $0x70] sm:$0xff]  ;;  %v76_v33 = vld [vmem:[#allocation5 + $0x78] sm:$0xff] }
  0x3e   :  { %381 = vmatpush3.bf16.msra.mxu0 %v380_v7  ;;  %v395_v31 = vpack.c.bf16 %v74_v30, %v73_v29  ;;  %v398_v34 = vpack.c.bf16 %v76_v33, %v75_v32  ;;  %v60_v35 = vld [vmem:[#allocation2] sm:$0xf]  ;;  %v165_v36 = vld [vmem:[#allocation7 + $0x30] sm:$0xff]  ;;  %v167_v39 = vld [vmem:[#allocation7 + $0x40] sm:$0xff] }
  0x3f   :  { %382 = vmatprep.subr.bf16.mxu0 %v534_v0  ;;  %v166_v37 = vld [vmem:[#allocation7 + $0x38] sm:$0xff]  ;;  %v168_v40 = vld [vmem:[#allocation7 + $0x48] sm:$0xff]  ;;  %v169_v42 = vld [vmem:[#allocation7 + $0x50] sm:$0xff] }
  0x40   :  { %405 = vmatpush3.bf16.msra.mxu1 %v404_v18  ;;  %v410_v38 = vpack.c.bf16 %v166_v37, %v165_v36  ;;  %v413_v41 = vpack.c.bf16 %v168_v40, %v167_v39  ;;  %v170_v43 = vld [vmem:[#allocation7 + $0x58] sm:$0xff]  ;;  %v171_v45 = vld [vmem:[#allocation7 + $0x60] sm:$0xff]  ;;  %v172_v46 = vld [vmem:[#allocation7 + $0x68] sm:$0xff] }
  0x41   :  { %406 = vmatprep.subr.bf16.mxu1 %v534_v0  ;;  %v416_v44 = vpack.c.bf16 %v170_v43, %v169_v42  ;;  %v419_v47 = vpack.c.bf16 %v172_v46, %v171_v45  ;;  %v173_v48 = vld [vmem:[#allocation7 + $0x70] sm:$0xff]  ;;  %v174_v49 = vld [vmem:[#allocation7 + $0x78] sm:$0xff] }
  0x42   :  { %384 = vmatpush3.bf16.msra.mxu0 %v383_v14  ;;  %v422_v50 = vpack.c.bf16 %v174_v49, %v173_v48  ;;  %v270_v51 = vld [vmem:[%s646_s2] ss:$0 sm:$0xff]  ;;  %s501_s2 = scalar_lea.vmem %s261_s8, 64 }
  0x43   :  { %385 = vmatprep.subr.bf16.mxu0 %v534_v0  ;;  %v271_v60 = vld [vmem:[%s648_s4] ss:$0 sm:$0xff]  ;;  %p502_p10 = scmp.ne.s32.totalorder %s261_s8, %s501_s2  ;;  %p507_p12 = scmp.lt.s32.totalorder %s501_s2, %s501_s2 }
  0x44   :  { %408 = vmatpush3.bf16.msra.mxu1 %v407_v24 }
  0x45   :  { %409 = vmatprep.subr.bf16.mxu1 %v534_v0  ;;  %p508_p13 = por %p507_p12, %p506_p11 }
  0x46   :  { %387 = vmatpush3.bf16.msra.mxu0 %v386_v21 }
  0x47   :  { %388 = vmatprep.subr.bf16.mxu0 %v534_v0  ;;  %p509_p0 = pnand %p508_p13, %p502_p10 }
  0x48   :  { %411 = vmatpush3.bf16.msra.mxu1 %v410_v38 }
  0x49   :  { %412 = vmatprep.subr.bf16.mxu1 %v534_v0 }
  0x4a   :  { %390 = vmatpush3.bf16.msra.mxu0 %v389_v25 }
  0x4b   :  { %391 = vmatprep.subr.bf16.mxu0 %v534_v0 }
  0x4c   :  { %414 = vmatpush3.bf16.msra.mxu1 %v413_v41 }
  0x4d   :  { %415 = vmatprep.subr.bf16.mxu1 %v534_v0 }
  0x4e   :  { %393 = vmatpush3.bf16.msra.mxu0 %v392_v28 }
  0x4f   :  { %394 = vmatprep.subr.bf16.mxu0 %v534_v0 }
  0x50   :  { %417 = vmatpush3.bf16.msra.mxu1 %v416_v44 }
  0x51   :  { %418 = vmatprep.subr.bf16.mxu1 %v534_v0 }
  0x52   :  { %396 = vmatpush3.bf16.msra.mxu0 %v395_v31 }
  0x53   :  { %397 = vmatprep.subr.bf16.mxu0 %v534_v0 }
  0x54   :  { %420 = vmatpush3.bf16.msra.mxu1 %v419_v47 }
  0x55   :  { %421 = vmatprep.subr.bf16.mxu1 %v534_v0 }
  0x56   :  { %399 = vmatpush3.bf16.msra.mxu0 %v398_v34 }
  0x58   :  { %423 = vmatpush3.bf16.msra.mxu1 %v422_v50 }
  0x59   :  { %339 = vmatmul.mubr.f32.vlgmr.msra.gmra.mrb[0].mxu0 %v60_v35 }
 0x12c   :  { %v150_v52 = vpop.f32.mrb[0].mxu0 }
 0x12d   :  { %v151_v53 = vadd.f32 %v270_v51, %v150_v52  ;;  %v340_v54 = vpop.f32.mrb[1].mxu0 }
 0x12f   :  { %v155_v55 = vmul.f32 0.70710677, %v151_v53  ;;  %v154_v57 = vmul.f32 0.5, %v151_v53 }
 0x131   :  { %433 = verf.f32 %v155_v55 }
 0x13b   :  { %v434_v56 = vpop.eup %433 }
 0x13c   :  { %v157_v58 = vadd.f32 1.0, %v434_v56 }
 0x13e   :  { %v158_v59 = vmul.f32 %v157_v58, %v154_v57 }
 0x140   :  { %374 = vmatmul.mubr.f32.vlgmr.msra.gmra.mrb[0].mxu1 %v158_v59 }
 0x213   :  { %v248_v61 = vpop.f32.mrb[0].mxu1 }
 0x214   :  { %v249_v62 = vadd.f32 %v271_v60, %v248_v61  ;;  %v375_v63 = vpop.f32.mrb[1].mxu1 }
 0x216   :  { %v252_v0 = vadd.f32 %v249_v62, %v60_v35 }
 0x218   :  { %253 = vst [vmem:[#allocation8] sm:$0xf] %v252_v0 }
 0x219   :  { %512 = shalt.err (!%p509_p0)
}
 0x21a   :  { %s513_s11 = scalar_lea.hbm %s649_s5, 64 }
 0x21b   :  { %p514_p1 = scmp.ne.s32.totalorder %s649_s5, %s513_s11  ;;  %p517_p2 = scmp.lt.u32.totalorder %s513_s11, %s649_s5 }
 0x21d   :  { %p519_p3 = pnand %p517_p2, %p514_p1 }
 0x21f   :  { %522 = shalt.err (!%p519_p3)
}
 0x220   :  { %263 = dma.vmem_to_hbm [thread:$0]  %s261_s8, 64, %s649_s5, [#allocation4]  }
 0x221   :  { %527 = dma.done.wait [#allocation4], 64  }
 0x222   :  { %528 = vsyncadd [#allocation4], 4294967232 }
 0x223   :  { %267 = vsyncpa [#allocation3], 1 }
 0x224   :  { %268 = vsyncpa [#allocation6], 1 }
 0x225   :  { %269 = vsyncpa [#allocation4], 1 }

</bundles_post_ra>
